<compile_context>
chip_gen: v7x
topology: tpu7x:2x2x1
jax: 0.10.0
libtpu: 0.0.40
codegen_flags: <defaults>
</compile_context>

<pallas_src>
import functools

import jax
import jax.numpy as jnp
from jax.experimental import pallas as pl
from jax.experimental.pallas import tpu as pltpu

_COLS = 1024  # lane-dense last dim (wide multiple of 128 -> unmasked wide stores)


def _round_down(v, m):
    return (v // m) * m


def _narrow_compute_ok():
    """bf16 VPU/EUP exists from v6e on; keep f32 math on older chips (v5e etc.)."""
    try:
        kind = jax.devices()[0].device_kind.lower()
    except Exception:
        return False
    return ("v6" in kind) or ("v7" in kind)


def _recip(v, approx):
    """Reciprocal routed to the EUP slot; bf16 values go through f32."""
    if v.dtype == jnp.float32:
        return pl.reciprocal(v, approx=approx)
    return pl.reciprocal(v.astype(jnp.float32), approx=True).astype(v.dtype)


def _mish_kernel(x_ref, o_ref, *, compute_dtype, approx):
    x = x_ref[...].astype(compute_dtype)
    # Rational form of tanh(softplus(x)) with u = exp(-|x|) (1 exp/elem, no overflow):
    #   x >= 0: (1 + 2u) / (1 + 2u + 2u^2)
    #   x <  0: (u^2 + 2u) / (u^2 + 2u + 2)
    u = jnp.exp(-jnp.abs(x))
    u2 = u * u
    pos = x >= 0
    num = (u + u) + jnp.where(pos, 1.0, u2)
    den = num + jnp.where(pos, u2 + u2, 2.0)
    y = x * (num * _recip(den, approx))
    o_ref[...] = y.astype(o_ref.dtype)


def _mish_tiled(x2d, tr, compute_dtype, approx, itemsize):
    rows, cols = x2d.shape
    n = rows * cols
    kernel = functools.partial(_mish_kernel, compute_dtype=compute_dtype, approx=approx)
    return pl.pallas_call(
        kernel,
        out_shape=jax.ShapeDtypeStruct((rows, cols), x2d.dtype),
        grid=(pl.cdiv(rows, tr),),
        in_specs=[pl.BlockSpec((tr, cols), lambda i: (i, 0))],
        out_specs=pl.BlockSpec((tr, cols), lambda i: (i, 0)),
        # "parallel" lets the row loop shard across v7x's two TensorCores; it is a
        # measured no-op on single-TC v5e/v6e.  (If xprof shows it not engaging on v7x,
        # switch to pltpu.CORE_PARALLEL.)
        compiler_params=pltpu.CompilerParams(
            dimension_semantics=("parallel",),
        ),
        cost_estimate=pl.CostEstimate(
            flops=12 * n,
            transcendentals=2 * n,  # exp + reciprocal
            bytes_accessed=2 * n * itemsize,
        ),
    )(x2d)


def _mish_single_tile(x2d, compute_dtype, approx):
    kernel = functools.partial(_mish_kernel, compute_dtype=compute_dtype, approx=approx)
    return pl.pallas_call(
        kernel,
        out_shape=jax.ShapeDtypeStruct(x2d.shape, x2d.dtype),
    )(x2d)


def mish(x: jax.Array, *, target_tile_bytes: int = 2 * 1024 * 1024,
         min_grid_steps: int = 4) -> jax.Array:
    """Elementwise Mish for any shape/dtype; bulk runs in a single tiled Pallas call."""
    orig_shape = x.shape
    dtype = x.dtype
    n = x.size
    if n == 0:
        return x

    itemsize = jnp.dtype(dtype).itemsize
    sub = {4: 8, 2: 16, 1: 32}.get(itemsize, 8)   # sublane granularity per dtype packing
    chunk = sub * _COLS                           # smallest aligned tile, in elements

    compute_dtype = dtype if (dtype == jnp.bfloat16 and _narrow_compute_ok()) else jnp.float32
    approx = dtype != jnp.float32   # approx reciprocal only when the output can't resolve it

    flat = x.reshape(-1)                          # free bitcast
    bulk_n = _round_down(n, chunk)                # aligned prefix: no pad, no extra copy
    tail_n = n - bulk_n                           # < chunk elements

    pieces = []
    if bulk_n:
        rows = bulk_n // _COLS                    # multiple of `sub` by construction
        # ~target_tile_bytes per block, but capped so the grid has >= min_grid_steps
        # steps (pipeline overlap; >= 2 programs so both v7x TCs get work).
        tr_target = max(sub, _round_down(target_tile_bytes // (_COLS * itemsize), sub))
        tr_cap = max(sub, _round_down(rows // min_grid_steps, sub))
        tr = min(tr_target, tr_cap)
        bulk_out = _mish_tiled(flat[:bulk_n].reshape(rows, _COLS), tr,
                               compute_dtype, approx, itemsize)
        if tail_n == 0:
            return bulk_out.reshape(orig_shape)
        pieces.append(bulk_out.reshape(-1))

    # Tail (or an entire tiny array): pad to exactly one (sub, 1024) tile and run a
    # single-block micro-call.  < chunk elements, so this pad/slice is negligible.
    tail = flat[bulk_n:]
    tail_out = _mish_single_tile(
        jnp.pad(tail, (0, chunk - tail_n)).reshape(sub, _COLS),
        compute_dtype, approx,
    ).reshape(-1)[:tail_n]
    pieces.append(tail_out)

    out = pieces[0] if len(pieces) == 1 else jnp.concatenate(pieces)
    return out.reshape(orig_shape)


def _mish_ref(x):
    return x * jnp.tanh(jax.nn.softplus(x))


if __name__ == "__main__":
    key = jax.random.PRNGKey(0)
    k1, k2, k3, k4 = jax.random.split(key, 4)

    # 1) Module-implied small NCHW activation (2,4,16,16): single-tile micro-call path.
    x1 = jax.random.normal(k1, (2, 4, 16, 16), dtype=jnp.float32) * 4.0
    y1 = jax.block_until_ready(mish(x1))
    assert y1.shape == x1.shape and y1.dtype == x1.dtype
    assert jnp.allclose(y1, _mish_ref(x1), atol=1e-5, rtol=1e-5), "mismatch (small path)"

    # 2) Aligned bulk path (zero pad/slice): 512 rows x 1024, 4 parallel grid steps.
    x2 = jax.random.normal(k2, (8, 64, 32, 32), dtype=jnp.float32) * 4.0
    y2 = jax.block_until_ready(mish(x2))
    assert jnp.allclose(y2, _mish_ref(x2), atol=1e-5, rtol=1e-5), "mismatch (aligned bulk)"

    # 3) Unaligned shape: aligned bulk + tiny tail micro-call + concat.
    x3 = jax.random.normal(k3, (4, 4, 33, 65), dtype=jnp.float32) * 4.0
    y3 = jax.block_until_ready(mish(x3))
    assert jnp.allclose(y3, _mish_ref(x3), atol=1e-5, rtol=1e-5), "mismatch (bulk+tail)"

    # 4) bf16 input (bf16 internal math on v6e/v7x, f32 elsewhere).
    x4 = (jax.random.normal(k4, (2, 8, 16, 32), dtype=jnp.float32) * 4.0).astype(jnp.bfloat16)
    y4 = jax.block_until_ready(mish(x4))
    assert y4.shape == x4.shape and y4.dtype == jnp.bfloat16
    assert jnp.allclose(y4.astype(jnp.float32), _mish_ref(x4.astype(jnp.float32)),
                        atol=2e-2, rtol=5e-2), "mismatch (bf16)"

    print("KERNEL_OK")
</pallas_src>

<mosaic_0001>
module attributes {stable_mosaic.version = 11 : i64} {
  func.func @_mish_kernel(%arg0: memref<8x1024xf32, #tpu.memory_space<vmem>>, %arg1: memref<8x1024xf32, #tpu.memory_space<vmem>>) attributes {dimension_semantics = [], scalar_prefetch = 0 : i64, scratch_operands = 0 : i64, tpu.core_type = #tpu.core_type<tc>} {
    %c0 = arith.constant 0 : index
    %c0_0 = arith.constant 0 : index
    %0 = vector.load %arg0[%c0, %c0_0] : memref<8x1024xf32, #tpu.memory_space<vmem>>, vector<8x1024xf32>
    %1 = math.absf %0 : vector<8x1024xf32>
    %cst = arith.constant 0.000000e+00 : f32
    %2 = vector.broadcast %cst : f32 to vector<8x1024xf32>
    %3 = arith.subf %2, %1 : vector<8x1024xf32>
    %4 = math.exp %3 : vector<8x1024xf32>
    %5 = arith.mulf %4, %4 : vector<8x1024xf32>
    %cst_1 = arith.constant 0.000000e+00 : f32
    %6 = vector.broadcast %cst_1 : f32 to vector<8x1024xf32>
    %7 = arith.cmpf oge, %0, %6 : vector<8x1024xf32>
    %8 = arith.addf %4, %4 : vector<8x1024xf32>
    %cst_2 = arith.constant 1.000000e+00 : f32
    %9 = vector.broadcast %cst_2 : f32 to vector<8x1024xf32>
    %10 = arith.select %7, %9, %5 : vector<8x1024xi1>, vector<8x1024xf32>
    %11 = arith.addf %8, %10 : vector<8x1024xf32>
    %12 = arith.addf %5, %5 : vector<8x1024xf32>
    %cst_3 = arith.constant 2.000000e+00 : f32
    %13 = vector.broadcast %cst_3 : f32 to vector<8x1024xf32>
    %14 = arith.select %7, %12, %13 : vector<8x1024xi1>, vector<8x1024xf32>
    %15 = arith.addf %11, %14 : vector<8x1024xf32>
    %16 = tpu.reciprocal %15 : vector<8x1024xf32> -> vector<8x1024xf32>
    %17 = arith.mulf %11, %16 : vector<8x1024xf32>
    %18 = arith.mulf %0, %17 : vector<8x1024xf32>
    %c0_4 = arith.constant 0 : index
    %c0_5 = arith.constant 0 : index
    %19 = vector.load %arg1[%c0_4, %c0_5] : memref<8x1024xf32, #tpu.memory_space<vmem>>, vector<8x1024xf32>
    tpu.vector_store %arg1[%c0_4, %c0_5], %18 {strides = array<i32>} : memref<8x1024xf32, #tpu.memory_space<vmem>>, vector<8x1024xf32>,
    return
  }
}

</mosaic_0001>

<bundles_post_ra>
// kernel: tpu_custom_call.1
= control target key start
LH: loop header
LB: loop body
LE: loop exit
PB: predicated region body
PF: predicated region fallthrough
CT: control target
= control target key end

     0   :  { %6 = vsyncpa [#allocation3], 0  ;;  %s362_s0 = inlined_call_operand.hbm [shape: f32[8,1024], index: 0, kind: input, shape index: {}]   ;;  %s363_s1 = inlined_call_operand.hbm [shape: f32[8,1024], index: 1, kind: output, shape index: {}]  }
   0x1   :  { %7 = vsyncpa [#allocation4], 0  ;;  %s254_s6 = smov [#allocation2]   ;;  %s206_s10 = scalar_lea.hbm %s362_s0, 1024 }
   0x2   :  { %s14_s7 = sshll.u32 %s254_s6, 4  ;;  %p207_p0 = scmp.ne.s32.totalorder %s362_s0, %s206_s10  ;;  %s15_s7 = int_to_ptr.vmem [resolvable:$true] %s14_s7 }
   0x3   :  { %p210_p1 = scmp.lt.u32.totalorder %s206_s10, %s362_s0 }
   0x5   :  { %p212_p2 = pnand %p210_p1, %p207_p0 }
   0x7   :  { %215 = shalt.err (!%p212_p2)
}
   0x8   :  { %s216_s15 = scalar_lea.vmem %s15_s7, 1024  ;;  %p221_p4 = scmp.lt.s32.totalorder %s15_s7, %s15_s7 }
   0x9   :  { %p217_p3 = scmp.ne.s32.totalorder %s15_s7, %s216_s15  ;;  %p222_p5 = scmp.lt.s32.totalorder %s216_s15, %s216_s15 }
   0xb   :  { %p223_p6 = por %p222_p5, %p221_p4 }
   0xd   :  { %p224_p7 = pnand %p223_p6, %p217_p3 }
   0xf   :  { %227 = shalt.err (!%p224_p7)
}
  0x10   :  { %17 = dma.hbm_to_vmem [thread:$0]  %s362_s0, 1024, %s15_s7, [#allocation3]  }
  0x11   :  { %250 = dma.done.wait [#allocation3], 1024  }
  0x12   :  { %251 = vsyncadd [#allocation3], 4294966272  ;;  %v278_v0 = vld [vmem:[#allocation2] sm:$0xff]  ;;  %v280_v1 = vld [vmem:[#allocation2 + $0x8] sm:$0xff]  ;;  %s255_s0 = smov [#allocation5]  }
  0x13   :  { %v282_v2 = vld [vmem:[#allocation2 + $0x10] sm:$0xff]  ;;  %v29_v3 = vand.u32 2147483647, %v278_v0  ;;  %v30_v4 = vand.u32 2147483647, %v280_v1  ;;  %v287_v6 = vld [vmem:[#allocation2 + $0x18] sm:$0xff] }
  0x14   :  { %v31_v5 = vand.u32 2147483647, %v282_v2  ;;  %v289_v7 = vld [vmem:[#allocation2 + $0x20] sm:$0xff]  ;;  %v291_v8 = vld [vmem:[#allocation2 + $0x28] sm:$0xff]  ;;  %v32_v11 = vand.u32 2147483647, %v287_v6 }
  0x15   :  { %v37_v9 = vsub.f32 0.0, %v29_v3  ;;  %v38_v10 = vsub.f32 0.0, %v30_v4  ;;  %v294_v12 = vld [vmem:[#allocation2 + $0x30] sm:$0xff]  ;;  %v33_v14 = vand.u32 2147483647, %v289_v7  ;;  %v299_v24 = vld [vmem:[#allocation2 + $0x38] sm:$0xff] }
  0x16   :  { %v39_v13 = vsub.f32 0.0, %v31_v5  ;;  %v34_v15 = vand.u32 2147483647, %v291_v8  ;;  %v40_v18 = vsub.f32 0.0, %v32_v11  ;;  %v35_v22 = vand.u32 2147483647, %v294_v12 }
  0x17   :  { %v45_v16 = vmul.f32 1.442695, %v37_v9  ;;  %v47_v17 = vmul.f32 1.442695, %v38_v10  ;;  %v41_v20 = vsub.f32 0.0, %v33_v14  ;;  %vm69_vm0 = vcmp.ge.f32.partialorder %v278_v0, 0.0 }
  0x18   :  { %v49_v19 = vmul.f32 1.442695, %v39_v13  ;;  %v42_v21 = vsub.f32 0.0, %v34_v15  ;;  %v51_v23 = vmul.f32 1.442695, %v40_v18  ;;  %v43_v26 = vsub.f32 0.0, %v35_v22 }
  0x19   :  { %174 = vpow2.f32 %v45_v16  ;;  %v53_v25 = vmul.f32 1.442695, %v41_v20  ;;  %v36_v28 = vand.u32 2147483647, %v299_v24  ;;  %vm70_vm1 = vcmp.ge.f32.partialorder %v280_v1, 0.0  ;;  %s163_s18 = sshll.u32 %s255_s0, 4  ;;  %s164_s18 = int_to_ptr.vmem [resolvable:$true] %s163_s18 }
  0x1a   :  { %176 = vpow2.f32 %v47_v17  ;;  %v55_v27 = vmul.f32 1.442695, %v42_v21  ;;  %v57_v30 = vmul.f32 1.442695, %v43_v26  ;;  %vm71_vm2 = vcmp.ge.f32.partialorder %v282_v2, 0.0  ;;  %s228_s19 = scalar_lea.vmem %s164_s18, 1024  ;;  %p233_p9 = scmp.lt.s32.totalorder %s164_s18, %s164_s18 }
  0x1b   :  { %178 = vpow2.f32 %v49_v19  ;;  %v44_v29 = vsub.f32 0.0, %v36_v28  ;;  %vm72_vm3 = vcmp.ge.f32.partialorder %v287_v6, 0.0  ;;  %vm73_vm4 = vcmp.ge.f32.partialorder %v289_v7, 0.0  ;;  %p229_p8 = scmp.ne.s32.totalorder %s164_s18, %s228_s19  ;;  %p234_p10 = scmp.lt.s32.totalorder %s228_s19, %s228_s19 }
  0x1c   :  { %180 = vpow2.f32 %v51_v23  ;;  %vm74_vm5 = vcmp.ge.f32.partialorder %v291_v8, 0.0  ;;  %vm75_vm6 = vcmp.ge.f32.partialorder %v294_v12, 0.0  ;;  %vm76_vm7 = vcmp.ge.f32.partialorder %v299_v24, 0.0 }
  0x1d   :  { %182 = vpow2.f32 %v53_v25  ;;  %v59_v31 = vmul.f32 1.442695, %v44_v29  ;;  %p235_p11 = por %p234_p10, %p233_p9 }
  0x1e   :  { %184 = vpow2.f32 %v55_v27 }
  0x1f   :  { %186 = vpow2.f32 %v57_v30  ;;  %p236_p12 = pnand %p235_p11, %p229_p8 }
  0x20   :  { %188 = vpow2.f32 %v59_v31 }
  0x23   :  { %v175_v32 = vpop.eup %174 }
  0x24   :  { %v177_v33 = vpop.eup %176  ;;  %v61_v34 = vmul.f32 %v175_v32, %v175_v32  ;;  %v77_v35 = vadd.f32 %v175_v32, %v175_v32 }
  0x25   :  { %v179_v36 = vpop.eup %178  ;;  %v62_v37 = vmul.f32 %v177_v33, %v177_v33  ;;  %v78_v38 = vadd.f32 %v177_v33, %v177_v33 }
  0x26   :  { %v181_v39 = vpop.eup %180  ;;  %v85_v40 = vsel %vm69_vm0, 1.0, %v61_v34  ;;  %v101_v41 = vadd.f32 %v61_v34, %v61_v34  ;;  %v63_v42 = vmul.f32 %v179_v36, %v179_v36  ;;  %v79_v43 = vadd.f32 %v179_v36, %v179_v36 }
  0x27   :  { %v93_v44 = vadd.f32 %v85_v40, %v77_v35  ;;  %v86_v45 = vsel %vm70_vm1, 1.0, %v62_v37  ;;  %v102_v46 = vadd.f32 %v62_v37, %v62_v37  ;;  %v64_v47 = vmul.f32 %v181_v39, %v181_v39  ;;  %v183_v48 = vpop.eup %182 }
  0x28   :  { %v109_v49 = vsel %vm69_vm0, %v101_v41, 2.0  ;;  %v94_v50 = vadd.f32 %v86_v45, %v78_v38  ;;  %v87_v51 = vsel %vm71_vm2, 1.0, %v63_v42  ;;  %v103_v52 = vadd.f32 %v63_v42, %v63_v42  ;;  %v185_v53 = vpop.eup %184 }
  0x29   :  { %v117_v54 = vadd.f32 %v109_v49, %v93_v44  ;;  %v110_v55 = vsel %vm70_vm1, %v102_v46, 2.0  ;;  %v95_v56 = vadd.f32 %v87_v51, %v79_v43  ;;  %v80_v57 = vadd.f32 %v181_v39, %v181_v39  ;;  %v187_v4 = vpop.eup %186 }
  0x2a   :  { %v118_v58 = vadd.f32 %v110_v55, %v94_v50  ;;  %v111_v59 = vsel %vm71_vm2, %v103_v52, 2.0  ;;  %v88_v60 = vsel %vm72_vm3, 1.0, %v64_v47  ;;  %v104_v61 = vadd.f32 %v64_v47, %v64_v47  ;;  %v189_v11 = vpop.eup %188 }
  0x2b   :  { %190 = vrcp.f32 %v117_v54  ;;  %v119_v62 = vadd.f32 %v111_v59, %v95_v56  ;;  %v96_v63 = vadd.f32 %v88_v60, %v80_v57  ;;  %v65_v3 = vmul.f32 %v183_v48, %v183_v48 }
  0x2c   :  { %192 = vrcp.f32 %v118_v58  ;;  %v112_v5 = vsel %vm72_vm3, %v104_v61, 2.0  ;;  %v81_v9 = vadd.f32 %v183_v48, %v183_v48  ;;  %v66_v10 = vmul.f32 %v185_v53, %v185_v53 }
  0x2d   :  { %194 = vrcp.f32 %v119_v62  ;;  %v120_v13 = vadd.f32 %v112_v5, %v96_v63  ;;  %v89_v14 = vsel %vm73_vm4, 1.0, %v65_v3  ;;  %v105_v15 = vadd.f32 %v65_v3, %v65_v3 }
  0x2e   :  { %v97_v16 = vadd.f32 %v89_v14, %v81_v9  ;;  %v82_v17 = vadd.f32 %v185_v53, %v185_v53  ;;  %v90_v18 = vsel %vm74_vm5, 1.0, %v66_v10  ;;  %v106_v19 = vadd.f32 %v66_v10, %v66_v10 }
  0x2f   :  { %196 = vrcp.f32 %v120_v13  ;;  %v113_v20 = vsel %vm73_vm4, %v105_v15, 2.0  ;;  %v67_v21 = vmul.f32 %v187_v4, %v187_v4  ;;  %v83_v22 = vadd.f32 %v187_v4, %v187_v4 }
  0x30   :  { %v121_v23 = vadd.f32 %v113_v20, %v97_v16  ;;  %v98_v25 = vadd.f32 %v90_v18, %v82_v17  ;;  %v114_v26 = vsel %vm74_vm5, %v106_v19, 2.0  ;;  %v68_v27 = vmul.f32 %v189_v11, %v189_v11 }
  0x31   :  { %v91_v28 = vsel %vm75_vm6, 1.0, %v67_v21  ;;  %v107_v29 = vadd.f32 %v67_v21, %v67_v21  ;;  %v84_v30 = vadd.f32 %v189_v11, %v189_v11 }
  0x32   :  { %198 = vrcp.f32 %v121_v23  ;;  %v122_v31 = vadd.f32 %v114_v26, %v98_v25  ;;  %v99_v32 = vadd.f32 %v91_v28, %v83_v22  ;;  %v92_v33 = vsel %vm76_vm7, 1.0, %v68_v27 }
  0x33   :  { %v115_v34 = vsel %vm75_vm6, %v107_v29, 2.0  ;;  %v100_v35 = vadd.f32 %v92_v33, %v84_v30  ;;  %v108_v36 = vadd.f32 %v68_v27, %v68_v27 }
  0x34   :  { %200 = vrcp.f32 %v122_v31  ;;  %v123_v37 = vadd.f32 %v115_v34, %v99_v32 }
  0x35   :  { %v191_v38 = vpop.eup %190  ;;  %v116_v39 = vsel %vm76_vm7, %v108_v36, 2.0 }
  0x36   :  { %v193_v40 = vpop.eup %192  ;;  %v133_v41 = vmul.f32 %v191_v38, %v93_v44  ;;  %202 = vrcp.f32 %v123_v37  ;;  %v124_v42 = vadd.f32 %v116_v39, %v100_v35 }
  0x37   :  { %v195_v43 = vpop.eup %194  ;;  %v134_v45 = vmul.f32 %v193_v40, %v94_v50 }
  0x38   :  { %v141_v46 = vmul.f32 %v133_v41, %v278_v0  ;;  %v135_v47 = vmul.f32 %v195_v43, %v95_v56  ;;  %204 = vrcp.f32 %v124_v42 }
  0x39   :  { %v197_v48 = vpop.eup %196  ;;  %v142_v49 = vmul.f32 %v134_v45, %v280_v1 }
  0x3a   :  { %149 = vst [vmem:[#allocation5] sm:$0xff] %v141_v46  ;;  %v143_v51 = vmul.f32 %v135_v47, %v282_v2  ;;  %v136_v52 = vmul.f32 %v197_v48, %v96_v63 }
  0x3b   :  { %150 = vst [vmem:[#allocation5 + $0x8] sm:$0xff] %v142_v49 }
  0x3c   :  { %v199_v53 = vpop.eup %198  ;;  %151 = vst [vmem:[#allocation5 + $0x10] sm:$0xff] %v143_v51  ;;  %v144_v44 = vmul.f32 %v136_v52, %v287_v6 }
  0x3d   :  { %v137_v54 = vmul.f32 %v199_v53, %v97_v16 }
  0x3e   :  { %v201_v55 = vpop.eup %200  ;;  %152 = vst [vmem:[#allocation5 + $0x18] sm:$0xff] %v144_v44 }
  0x3f   :  { %v145_v50 = vmul.f32 %v137_v54, %v289_v7  ;;  %v138_v0 = vmul.f32 %v201_v55, %v98_v25 }
  0x40   :  { %v203_v56 = vpop.eup %202 }
  0x41   :  { %153 = vst [vmem:[#allocation5 + $0x20] sm:$0xff] %v145_v50  ;;  %v146_v57 = vmul.f32 %v138_v0, %v291_v8  ;;  %v139_v1 = vmul.f32 %v203_v56, %v99_v32 }
  0x42   :  { %v205_v58 = vpop.eup %204 }
  0x43   :  { %154 = vst [vmem:[#allocation5 + $0x28] sm:$0xff] %v146_v57  ;;  %v147_v2 = vmul.f32 %v139_v1, %v294_v12  ;;  %v140_v59 = vmul.f32 %v205_v58, %v100_v35 }
  0x45   :  { %155 = vst [vmem:[#allocation5 + $0x30] sm:$0xff] %v147_v2  ;;  %v148_v6 = vmul.f32 %v140_v59, %v299_v24 }
  0x47   :  { %156 = vst [vmem:[#allocation5 + $0x38] sm:$0xff] %v148_v6 }
  0x48   :  { %239 = shalt.err (!%p236_p12)
}
  0x49   :  { %s240_s22 = scalar_lea.hbm %s363_s1, 1024 }
  0x4a   :  { %p241_p13 = scmp.ne.s32.totalorder %s363_s1, %s240_s22  ;;  %p244_p0 = scmp.lt.u32.totalorder %s240_s22, %s363_s1 }
  0x4c   :  { %p246_p1 = pnand %p244_p0, %p241_p13 }
  0x4e   :  { %249 = shalt.err (!%p246_p1)
}
  0x4f   :  { %166 = dma.vmem_to_hbm [thread:$0]  %s164_s18, 1024, %s363_s1, [#allocation4]  }
  0x50   :  { %252 = dma.done.wait [#allocation4], 1024  }
  0x51   :  { %253 = vsyncadd [#allocation4], 4294966272 }
  0x52   :  { %170 = vsyncpa [#allocation3], 1 }
  0x53   :  { %171 = vsyncpa [#allocation4], 1 }

</bundles_post_ra>
